<compile_context>
chip_gen: v7x
topology: tpu7x:2x2x1
jax: 0.10.0
libtpu: 0.0.40
codegen_flags: <defaults>
</compile_context>

<pallas_src>
import functools
import math

import jax
import jax.numpy as jnp
from jax.experimental import pallas as pl
from jax.experimental.pallas import tpu as pltpu


# ----------------------------------------------------------------------------
# Kernels
# ----------------------------------------------------------------------------
def _mctct_kernel_single_k(x_ref, w_ref, o_ref):
    # One MXU pass over the full (padded) K dimension; ReLU fused into store.
    acc = jnp.dot(x_ref[...], w_ref[...], preferred_element_type=jnp.float32)
    o_ref[...] = jnp.maximum(acc, 0.0).astype(o_ref.dtype)


def _mctct_kernel_multi_k(x_ref, w_ref, o_ref, acc_ref):
    # Fallback for very large hidden sizes: classic K reduction with f32
    # VMEM accumulator, ReLU fused into the final-K write-back.
    k = pl.program_id(2)

    @pl.when(k == 0)
    def _():
        acc_ref[...] = jnp.zeros_like(acc_ref)

    acc_ref[...] += jnp.dot(
        x_ref[...], w_ref[...], preferred_element_type=jnp.float32)

    @pl.when(k == pl.num_programs(2) - 1)
    def _():
        o_ref[...] = jnp.maximum(acc_ref[...], 0.0).astype(o_ref.dtype)


# ----------------------------------------------------------------------------
# Helpers
# ----------------------------------------------------------------------------
def _round_up(x, m):
    return ((x + m - 1) // m) * m


def _vmem_cap_bytes():
    """Generation-aware VMEM cap: ~13/16 of physical per-core VMEM."""
    try:
        cap = pltpu.get_tpu_info().vmem_capacity_bytes
    except Exception:  # pragma: no cover - conservative fallback (v7x-safe)
        cap = 64 << 20
    return (cap * 13) // 16


# ----------------------------------------------------------------------------
# Wrapper
# ----------------------------------------------------------------------------
def mctct_intermediate_pallas(hidden_states, weight, *,
                              hidden_act="relu",
                              tm=512, tn=1024, tk=1024, tk_cap=2048,
                              out_dtype=jnp.bfloat16,
                              force_pallas=False):
    """hidden_states: [..., H];  weight: [H, I] (transpose of torch Linear.weight)."""
    if hidden_act != "relu":
        raise NotImplementedError(
            "mctct_intermediate_pallas only implements hidden_act='relu'")

    orig_shape = hidden_states.shape
    H = orig_shape[-1]
    M = math.prod(orig_shape[:-1])
    assert weight.shape[0] == H
    I = weight.shape[1]

    compute_dtype = jnp.bfloat16

    # Small-shape fast path: pallas_call fixed cost dominates, MXU <1% utilized.
    if not force_pallas and (M * H * I) < (1 << 22):
        x = hidden_states.astype(compute_dtype)
        w = weight if weight.dtype == compute_dtype else weight.astype(compute_dtype)
        y = jnp.einsum("...h,hi->...i", x, w, preferred_element_type=jnp.float32)
        return jax.nn.relu(y).astype(out_dtype)

    # Cast only if needed; callers should pre-cast weights once (hoisted cast).
    x2d = hidden_states.reshape(M, H)
    if x2d.dtype != compute_dtype:
        x2d = x2d.astype(compute_dtype)
    w = weight if weight.dtype == compute_dtype else weight.astype(compute_dtype)

    # ---- tile selection + padding (zero padding is exact for matmul+ReLU) ----
    # M (sublane dim of x / out): align to 16 for bf16 sublane packing.
    M_pad = _round_up(M, 16)
    tm_t = min(tm, M_pad)
    M_pad = _round_up(M_pad, tm_t)

    # K (lane dim of x, sublane dim of w): collapse to a single K step if the
    # padded hidden size fits the cap (always true for MCTCT H=1536).
    K_pad = _round_up(H, 128)
    if K_pad <= tk_cap:
        tk_t = K_pad
    else:
        tk_t = min(tk, tk_cap)
        K_pad = _round_up(H, tk_t)

    # N (lane dim of w / out): lane-dense output stores.
    N_pad = _round_up(I, 128)
    tn_t = min(tn, N_pad)
    N_pad = _round_up(N_pad, tn_t)

    # Megacore (v7x): keep at least one "parallel" axis with >= 2 blocks.
    if (M_pad // tm_t) == 1 and (N_pad // tn_t) == 1 and N_pad >= 256:
        tn_t = max(128, _round_up(tn_t // 2, 128))
        N_pad = _round_up(I, tn_t)

    if M_pad != M or K_pad != H:
        x2d = jnp.pad(x2d, ((0, M_pad - M), (0, K_pad - H)))
    if K_pad != H or N_pad != I:
        w = jnp.pad(w, ((0, K_pad - H), (0, N_pad - I)))

    gm, gn, gk = M_pad // tm_t, N_pad // tn_t, K_pad // tk_t
    multi_k = gk > 1

    # ---- VMEM budget: itemized double buffers + small margin, gen-aware cap ----
    out_bytes = jnp.dtype(out_dtype).itemsize
    needed = 2 * (tm_t * tk_t + tk_t * tn_t) * 2      # x/w double buffers (bf16)
    needed += 2 * tm_t * tn_t * out_bytes             # output double buffer
    if multi_k:
        needed += tm_t * tn_t * 4                     # f32 accumulator scratch
    vmem_bytes = min(max(needed + (4 << 20), 32 << 20), _vmem_cap_bytes())

    if multi_k:
        grid_spec = pltpu.PrefetchScalarGridSpec(
            num_scalar_prefetch=0,
            grid=(gm, gn, gk),
            in_specs=[
                pl.BlockSpec((tm_t, tk_t), lambda i, j, k: (i, k)),
                pl.BlockSpec((tk_t, tn_t), lambda i, j, k: (k, j)),
            ],
            out_specs=pl.BlockSpec((tm_t, tn_t), lambda i, j, k: (i, j)),
            scratch_shapes=[pltpu.VMEM((tm_t, tn_t), jnp.float32)],
        )
        kernel = _mctct_kernel_multi_k
        dim_sem = ("parallel", "parallel", "arbitrary")
    else:
        grid_spec = pltpu.PrefetchScalarGridSpec(
            num_scalar_prefetch=0,
            grid=(gm, gn),
            in_specs=[
                # x index is constant across j -> X tile stays resident per row i.
                pl.BlockSpec((tm_t, tk_t), lambda i, j: (i, 0)),
                pl.BlockSpec((tk_t, tn_t), lambda i, j: (0, j)),
            ],
            out_specs=pl.BlockSpec((tm_t, tn_t), lambda i, j: (i, j)),
        )
        kernel = _mctct_kernel_single_k
        dim_sem = ("parallel", "parallel")

    out = pl.pallas_call(
        kernel,
        out_shape=jax.ShapeDtypeStruct((M_pad, N_pad), out_dtype),
        grid_spec=grid_spec,
        compiler_params=pltpu.CompilerParams(
            dimension_semantics=dim_sem,
            vmem_limit_bytes=vmem_bytes,
        ),
    )(x2d, w)

    out = out[:M, :I]
    return out.reshape(*orig_shape[:-1], I)


# ----------------------------------------------------------------------------
# Pure-JAX references.
# ----------------------------------------------------------------------------
def mctct_intermediate_reference_f32(x, w):
    return jax.nn.relu(jnp.einsum("...h,hi->...i", x, w))


def mctct_intermediate_reference_bf16(x, w):
    y = jnp.einsum("...h,hi->...i",
                   x.astype(jnp.bfloat16), w.astype(jnp.bfloat16),
                   preferred_element_type=jnp.float32)
    return jax.nn.relu(y)


# ----------------------------------------------------------------------------
if __name__ == "__main__":
    # Small MCTCT-like config.
    B, L = 2, 8
    hidden = 32
    intermediate = 64

    key = jax.random.PRNGKey(0)
    kx, kw = jax.random.split(key)
    x = jax.random.normal(kx, (B, L, hidden), jnp.float32)
    # W stored [in_features, out_features] (transpose of PyTorch nn.Linear.weight).
    w = 0.02 * jax.random.normal(kw, (hidden, intermediate), jnp.float32)
    # Hoisted weight cast: cast once at "load time", not per forward call.
    w_bf16 = w.astype(jnp.bfloat16)

    # Force the Pallas path at this small shape so the kernel itself runs.
    out = mctct_intermediate_pallas(x, w_bf16, force_pallas=True)
    out = jax.block_until_ready(out)
    assert out.shape == (B, L, intermediate)
    out_f32 = out.astype(jnp.float32)

    # Check vs. bf16-operand / f32-accumulation reference (bf16 output rounding).
    ref_bf16 = jax.block_until_ready(mctct_intermediate_reference_bf16(x, w))
    err_bf16 = float(jnp.max(jnp.abs(out_f32 - ref_bf16)))
    assert err_bf16 < 5e-3, f"mismatch vs bf16 reference: {err_bf16}"

    # Looser check vs. exact f32 PyTorch semantics (bf16 operand rounding).
    with jax.default_matmul_precision("highest"):
        ref_f32 = jax.block_until_ready(mctct_intermediate_reference_f32(x, w))
    err_f32 = float(jnp.max(jnp.abs(out_f32 - ref_f32)))
    assert err_f32 < 2e-2, f"mismatch vs f32 reference: {err_f32}"

    # Auto path (small-shape XLA fallback) should agree with the kernel.
    out_auto = jax.block_until_ready(mctct_intermediate_pallas(x, w_bf16))
    err_auto = float(jnp.max(jnp.abs(out_auto.astype(jnp.float32) - out_f32)))
    assert err_auto < 5e-3, f"fallback/kernel mismatch: {err_auto}"

    print("KERNEL_OK")
</pallas_src>

<mosaic_0001>
module attributes {stable_mosaic.version = 11 : i64} {
  func.func @_mctct_kernel_single_k(%arg0: i32, %arg1: i32, %arg2: memref<16x128xbf16, #tpu.memory_space<vmem>>, %arg3: memref<128x128xbf16, #tpu.memory_space<vmem>>, %arg4: memref<16x128xbf16, #tpu.memory_space<vmem>>) attributes {dimension_semantics = [#tpu.dimension_semantics<parallel>, #tpu.dimension_semantics<parallel>], iteration_bounds = array<i64: 1, 1>, scalar_prefetch = 0 : i64, scratch_operands = 0 : i64, tpu.core_type = #tpu.core_type<tc>, window_params = [{transform_indices = @transform_0, window_bounds = array<i64: 16, 128>}, {transform_indices = @transform_1, window_bounds = array<i64: 128, 128>}, {transform_indices = @transform_2, window_bounds = array<i64: 16, 128>}]} {
    %c0 = arith.constant 0 : index
    %c0_0 = arith.constant 0 : index
    %0 = vector.load %arg2[%c0, %c0_0] : memref<16x128xbf16, #tpu.memory_space<vmem>>, vector<16x128xbf16>
    %c0_1 = arith.constant 0 : index
    %c0_2 = arith.constant 0 : index
    %1 = vector.load %arg3[%c0_1, %c0_2] : memref<128x128xbf16, #tpu.memory_space<vmem>>, vector<128x128xbf16>
    %cst = arith.constant dense<0.000000e+00> : vector<16x128xf32>
    %2 = tpu.matmul %0, %1, %cst {dimension_numbers = #tpu.dot_dimension_numbers<[1], [0], [0], [1], [0, 0, 1, 1], [], []>} : vector<16x128xbf16>, vector<128x128xbf16>, vector<16x128xf32> -> vector<16x128xf32>
    %cst_3 = arith.constant 0.000000e+00 : f32
    %3 = vector.broadcast %cst_3 : f32 to vector<16x128xf32>
    %4 = arith.maximumf %2, %3 : vector<16x128xf32>
    %5 = arith.truncf %4 : vector<16x128xf32> to vector<16x128xbf16>
    %c0_4 = arith.constant 0 : index
    %c0_5 = arith.constant 0 : index
    %6 = vector.load %arg4[%c0_4, %c0_5] : memref<16x128xbf16, #tpu.memory_space<vmem>>, vector<16x128xbf16>
    tpu.vector_store %arg4[%c0_4, %c0_5], %5 {strides = array<i32>} : memref<16x128xbf16, #tpu.memory_space<vmem>>, vector<16x128xbf16>,
    return
  }
  func.func @transform_0(%arg0: i32, %arg1: i32) -> (i32, i32) {
    %c0_i32 = arith.constant 0 : i32
    %c0_i32_0 = arith.constant 0 : i32
    return %arg0, %c0_i32 : i32, i32
  }
  func.func @transform_1(%arg0: i32, %arg1: i32) -> (i32, i32) {
    %c0_i32 = arith.constant 0 : i32
    %c0_i32_0 = arith.constant 0 : i32
    return %c0_i32, %arg1 : i32, i32
  }
  func.func @transform_2(%arg0: i32, %arg1: i32) -> (i32, i32) {
    %c0_i32 = arith.constant 0 : i32
    return %arg0, %arg1 : i32, i32
  }
}

</mosaic_0001>

<bundles_post_ra>
// kernel: tpu_custom_call.1
= control target key start
LH: loop header
LB: loop body
LE: loop exit
PB: predicated region body
PF: predicated region fallthrough
CT: control target
= control target key end

     0   :  { %7 = vsyncpa [#allocation3], 0  ;;  %s386_s0 = inlined_call_operand.hbm [shape: bf16[16,128], index: 0, kind: input, shape index: {}]   ;;  %s387_s1 = inlined_call_operand.hbm [shape: bf16[128,128], index: 1, kind: input, shape index: {}]   ;;  %s388_s2 = inlined_call_operand.hbm [shape: bf16[16,128], index: 2, kind: output, shape index: {}]  }
   0x1   :  { %8 = vsyncpa [#allocation6], 0 }
   0x2   :  { %9 = vsyncpa [#allocation4], 0  ;;  %s319_s9 = smov [#allocation2]   ;;  %s247_s13 = scalar_lea.hbm %s386_s0, 128 }
   0x3   :  { %s15_s10 = sshll.u32 %s319_s9, 4  ;;  %p248_p0 = scmp.ne.s32.totalorder %s386_s0, %s247_s13  ;;  %s16_s10 = int_to_ptr.vmem [resolvable:$true] %s15_s10 }
   0x4   :  { %p251_p1 = scmp.lt.u32.totalorder %s247_s13, %s386_s0 }
   0x6   :  { %p253_p2 = pnand %p251_p1, %p248_p0 }
   0x8   :  { %256 = shalt.err (!%p253_p2)
}
   0x9   :  { %s257_s18 = scalar_lea.vmem %s16_s10, 128  ;;  %p262_p4 = scmp.lt.s32.totalorder %s16_s10, %s16_s10 }
   0xa   :  { %p258_p3 = scmp.ne.s32.totalorder %s16_s10, %s257_s18  ;;  %p263_p5 = scmp.lt.s32.totalorder %s257_s18, %s257_s18 }
   0xc   :  { %p264_p6 = por %p263_p5, %p262_p4 }
   0xe   :  { %p265_p7 = pnand %p264_p6, %p258_p3 }
  0x10   :  { %268 = shalt.err (!%p265_p7)
}
  0x11   :  { %s320_s19 = smov 64   ;;  %s321_s20 = smov 4  }
  0x12   :  { %21 = dma.hbm_to_vmem [thread:$0]  %s386_s0, 128, %s16_s10, [#allocation3], %s320_s19, %s320_s19, %s321_s20  }
  0x13   :  { %s322_s23 = smov [#allocation5]   ;;  %s269_s27 = scalar_lea.hbm %s387_s1, 1024 }
  0x14   :  { %s27_s24 = sshll.u32 %s322_s23, 4  ;;  %p270_p8 = scmp.ne.s32.totalorder %s387_s1, %s269_s27  ;;  %s28_s24 = int_to_ptr.vmem [resolvable:$true] %s27_s24 }
  0x15   :  { %p273_p9 = scmp.lt.u32.totalorder %s269_s27, %s387_s1 }
  0x17   :  { %p275_p10 = pnand %p273_p9, %p270_p8 }
  0x19   :  { %278 = shalt.err (!%p275_p10)
}
  0x1a   :  { %s279_s4 = scalar_lea.vmem %s28_s24, 1024  ;;  %p284_p12 = scmp.lt.s32.totalorder %s28_s24, %s28_s24 }
  0x1b   :  { %p280_p11 = scmp.ne.s32.totalorder %s28_s24, %s279_s4  ;;  %p285_p13 = scmp.lt.s32.totalorder %s279_s4, %s279_s4 }
  0x1d   :  { %p286_p0 = por %p285_p13, %p284_p12 }
  0x1f   :  { %p287_p1 = pnand %p286_p0, %p280_p11 }
  0x21   :  { %290 = shalt.err (!%p287_p1)
}
  0x22   :  { %33 = dma.hbm_to_vmem [thread:$0]  %s387_s1, 1024, %s28_s24, [#allocation6], %s320_s19, %s320_s19, %s321_s20  }
  0x23   :  { %313 = dma.done.wait [#allocation3], 128  }
  0x24   :  { %314 = vsyncadd [#allocation3], 4294967168 }
  0x25   :  { %315 = dma.done.wait [#allocation6], 1024  }
  0x26   :  { %316 = vsyncadd [#allocation6], 4294966272  ;;  %v323_v0 = vmov 0.0   ;;  %vm324_vm0 = vmmov 0   ;;  %v238_v1 = vld [vmem:[#allocation5] sm:$0xff]   ;;  %v239_v2 = vld [vmem:[#allocation5 + $0x8] sm:$0xff]  }
  0x27   :  { %211 = vmatprep.subr.bf16.mxu0 %v323_v0  ;;  %227 = vmatprep.mubr.msk.bf16.mxu0 %vm324_vm0, %v323_v0  ;;  %v240_v3 = vld [vmem:[#allocation5 + $0x10] sm:$0xff]   ;;  %v241_v4 = vld [vmem:[#allocation5 + $0x18] sm:$0xff]   ;;  %v242_v5 = vld [vmem:[#allocation5 + $0x20] sm:$0xff]   ;;  %s325_s1 = smov [#allocation7]  }
  0x28   :  { %212 = vmatpush3.bf16.msra.mxu0 %v238_v1  ;;  %v243_v6 = vld [vmem:[#allocation5 + $0x28] sm:$0xff]   ;;  %v244_v7 = vld [vmem:[#allocation5 + $0x30] sm:$0xff]   ;;  %v245_v8 = vld [vmem:[#allocation5 + $0x38] sm:$0xff]   ;;  %s171_s6 = sshll.u32 %s325_s1, 4  ;;  %s172_s6 = int_to_ptr.vmem [resolvable:$true] %s171_s6 }
  0x29   :  { %213 = vmatprep.subr.bf16.mxu0 %v323_v0  ;;  %v246_v9 = vld [vmem:[#allocation2] sm:$0xff]   ;;  %s291_s7 = scalar_lea.vmem %s172_s6, 128  ;;  %p296_p3 = scmp.lt.s32.totalorder %s172_s6, %s172_s6 }
  0x2a   :  { %p292_p2 = scmp.ne.s32.totalorder %s172_s6, %s291_s7  ;;  %p297_p4 = scmp.lt.s32.totalorder %s291_s7, %s291_s7 }
  0x2c   :  { %214 = vmatpush3.bf16.msra.mxu0 %v239_v2  ;;  %p298_p5 = por %p297_p4, %p296_p3 }
  0x2d   :  { %215 = vmatprep.subr.bf16.mxu0 %v323_v0 }
  0x2e   :  { %p299_p6 = pnand %p298_p5, %p292_p2 }
  0x30   :  { %216 = vmatpush3.bf16.msra.mxu0 %v240_v3 }
  0x31   :  { %217 = vmatprep.subr.bf16.mxu0 %v323_v0 }
  0x34   :  { %218 = vmatpush3.bf16.msra.mxu0 %v241_v4 }
  0x35   :  { %219 = vmatprep.subr.bf16.mxu0 %v323_v0 }
  0x38   :  { %220 = vmatpush3.bf16.msra.mxu0 %v242_v5 }
  0x39   :  { %221 = vmatprep.subr.bf16.mxu0 %v323_v0 }
  0x3c   :  { %222 = vmatpush3.bf16.msra.mxu0 %v243_v6 }
  0x3d   :  { %223 = vmatprep.subr.bf16.mxu0 %v323_v0 }
  0x40   :  { %224 = vmatpush3.bf16.msra.mxu0 %v244_v7 }
  0x41   :  { %225 = vmatprep.subr.bf16.mxu0 %v323_v0 }
  0x44   :  { %226 = vmatpush3.bf16.msra.mxu0 %v245_v8 }
  0x47   :  { %228 = vmatmul.mubr.bf16.vlgmr.msra.gmra.mrb[0].mxu0 %v246_v9 }
 0x11a   :  { %v147_v10 = vpop.f32.mrb[0].mxu0 }
 0x11b   :  { %v229_v11 = vpop.f32.mrb[1].mxu0  ;;  %v154_v13 = vmax.f32 %v147_v10, 0.0 }
 0x11c   :  { %v150_v12 = vpop.f32.mrb[2].mxu0 }
 0x11d   :  { %v155_v14 = vmax.f32 %v150_v12, 0.0  ;;  %v230_v15 = vpop.f32.mrb[3].mxu0 }
 0x11f   :  { %v200_v16 = vpack.c.bf16 %v155_v14, %v154_v13 }
 0x121   :  { %201 = vst [vmem:[#allocation7] sm:$0xff] %v200_v16  }
 0x122   :  { %302 = shalt.err (!%p299_p6)
}
 0x123   :  { %s303_s10 = scalar_lea.hbm %s388_s2, 128 }
 0x124   :  { %p304_p7 = scmp.ne.s32.totalorder %s388_s2, %s303_s10  ;;  %p307_p8 = scmp.lt.u32.totalorder %s303_s10, %s388_s2 }
 0x126   :  { %p309_p9 = pnand %p307_p8, %p304_p7 }
 0x128   :  { %312 = shalt.err (!%p309_p9)
}
 0x129   :  { %177 = dma.vmem_to_hbm [thread:$0]  %s172_s6, 128, %s388_s2, [#allocation4], %s320_s19, %s320_s19, %s321_s20  }
 0x12a   :  { %317 = dma.done.wait [#allocation4], 128  }
 0x12b   :  { %318 = vsyncadd [#allocation4], 4294967168 }
 0x12c   :  { %181 = vsyncpa [#allocation3], 1 }
 0x12d   :  { %182 = vsyncpa [#allocation6], 1 }
 0x12e   :  { %183 = vsyncpa [#allocation4], 1 }

</bundles_post_ra>
